<compile_context>
chip_gen: v5e
topology: v5e:2x2
jax: 0.10.0
libtpu: 0.0.40
codegen_flags: <defaults>
</compile_context>

<pallas_src>
import functools

import jax
import jax.numpy as jnp
from jax.experimental import pallas as pl
from jax.experimental.pallas import tpu as pltpu

LANE = 128       # lane width; only the stored output feature axis pads to it
ROW_ALIGN = 16   # batch-tile alignment (bf16 output native sublane packing)


def _round_up(n, m):
    return ((n + m - 1) // m) * m


# ----------------------------------------------------------------------------
# Pallas kernel: fused  y = relu(x @ W1 + b1) @ W2 + b2   (one batch tile)
# ----------------------------------------------------------------------------
def _mlp_kernel(x_ref, w1_ref, b1_ref, w2_ref, b2_ref, o_ref):
    # x_ref: [tb, Din] f32 -> bf16 cast done in-kernel (no padded copy in HBM)
    x = x_ref[...].astype(jnp.bfloat16)
    h = jnp.dot(x, w1_ref[...], preferred_element_type=jnp.float32)   # MXU
    h = jnp.maximum(h + b1_ref[...], 0.0)                             # f32 VPU
    y = jnp.dot(h.astype(jnp.bfloat16), w2_ref[...],
                preferred_element_type=jnp.float32)                   # MXU
    o_ref[...] = (y + b2_ref[...]).astype(o_ref.dtype)  # bf16, lane-dense store


def mlp_forward_pallas(x_pad, w1, b1, w2, b2, *, tb):
    """Fused MLP forward over a batch grid; weights stay resident in VMEM."""
    B, d_in = x_pad.shape
    h = w1.shape[1]
    dout_p = w2.shape[1]
    assert B % tb == 0
    nb = B // tb

    return pl.pallas_call(
        _mlp_kernel,
        out_shape=jax.ShapeDtypeStruct((B, dout_p), jnp.bfloat16),
        grid=(nb,),
        in_specs=[
            pl.BlockSpec((tb, d_in), lambda i: (i, 0)),    # batch tile of x
            pl.BlockSpec((d_in, h), lambda i: (0, 0)),     # W1 resident
            pl.BlockSpec((1, h), lambda i: (0, 0)),        # b1 resident
            pl.BlockSpec((h, dout_p), lambda i: (0, 0)),   # W2 resident
            pl.BlockSpec((1, dout_p), lambda i: (0, 0)),   # b2 resident
        ],
        out_specs=pl.BlockSpec((tb, dout_p), lambda i: (i, 0)),
        compiler_params=pltpu.CompilerParams(
            dimension_semantics=("parallel",)),            # v7x: 2 TCs split tiles
    )(x_pad, w1, b1, w2, b2)


@functools.partial(jax.jit, static_argnames=("tb", "d_out"))
def _mlp_forward(x, w1, b1, w2, b2, *, tb, d_out):
    """jit-fused: (optional) batch pad -> fused Pallas MLP -> slice -> f32."""
    B = x.shape[0]
    b_pad = _round_up(B, tb)
    if b_pad != B:  # trace-time branch; the pad fuses under jit
        x = jnp.zeros((b_pad, x.shape[1]), x.dtype).at[:B].set(x)
    y_pad = mlp_forward_pallas(x, w1, b1, w2, b2, tb=tb)
    return y_pad[:B, :d_out].astype(jnp.float32)


def _num_parallel_tiles():
    """2 parallel batch tiles on dual-TC v7x, 1 on single-TC v5e/v6e."""
    try:
        kind = jax.devices()[0].device_kind.lower()
    except Exception:
        return 1
    return 2 if "v7" in kind else 1


def _pick_tb(batch, n_par):
    tb = -(-batch // n_par)                        # ceil-split across cores
    tb = _round_up(max(tb, ROW_ALIGN), ROW_ALIGN)
    return min(tb, 512)                            # large-B tile near HBM roofline


# ----------------------------------------------------------------------------
# The wrapped "network" (the torch network handed to WrappedModel)
# ----------------------------------------------------------------------------
class MLPNetwork:
    """Small deterministic MLP whose forward runs as a fused Pallas TPU kernel."""

    def __init__(self, key, d_in, d_hidden, d_out):
        assert d_in % 8 == 0 and d_hidden % 8 == 0   # sublane-aligned K dims
        self.d_in, self.d_hidden, self.d_out = d_in, d_hidden, d_out
        self.d_out_p = _round_up(d_out, LANE)        # only stored lane dim padded

        k1, k2, k3, k4 = jax.random.split(key, 4)
        # PyTorch nn.Linear weight is [out, in]; store pre-transposed [in, out].
        w1 = jax.random.normal(k1, (d_in, d_hidden), jnp.float32) * 0.1
        b1 = jax.random.normal(k2, (d_hidden,), jnp.float32) * 0.1
        w2 = jax.random.normal(k3, (d_hidden, d_out), jnp.float32) * 0.1
        b2 = jax.random.normal(k4, (d_out,), jnp.float32) * 0.1

        self.w1 = w1.astype(jnp.bfloat16)                         # (Din, H) bf16
        self.b1 = b1.reshape(1, d_hidden)                         # (1, H)   f32
        self.w2 = (jnp.zeros((d_hidden, self.d_out_p), jnp.bfloat16)
                   .at[:, :d_out].set(w2.astype(jnp.bfloat16)))   # (H, Dout_p)
        self.b2 = (jnp.zeros((1, self.d_out_p), jnp.float32)
                   .at[0, :d_out].set(b2))                        # (1, Dout_p)

        self._n_par = _num_parallel_tiles()

    def __call__(self, x):
        B, d_in = x.shape
        assert d_in == self.d_in
        tb = _pick_tb(B, self._n_par)
        return _mlp_forward(x, self.w1, self.b1, self.w2, self.b2,
                            tb=tb, d_out=self.d_out)


# ----------------------------------------------------------------------------
# WrappedModel: exact semantics of the PyTorch module (pure pass-through)
# ----------------------------------------------------------------------------
class WrappedModel:
    """Wrapper that forwards *x to the wrapped network (deepSIP/utils.py)."""

    def __init__(self, network):
        self.module = network

    def __call__(self, *x):
        """pass arguments to forward of module"""
        return self.module(*x)


if __name__ == "__main__":
    key = jax.random.PRNGKey(0)
    k_param, k_x = jax.random.split(key)

    B, D_IN, D_HIDDEN, D_OUT = 256, 32, 64, 16

    net = MLPNetwork(k_param, D_IN, D_HIDDEN, D_OUT)
    model = WrappedModel(net)

    x = jax.random.normal(k_x, (B, D_IN), jnp.float32)

    y = jax.block_until_ready(model(x))

    # Reference check against plain-JAX forward using the same bf16-quantized
    # weights / activations / output the kernel uses.
    xq = x.astype(jnp.bfloat16).astype(jnp.float32)
    w1q = net.w1.astype(jnp.float32)
    b1q = net.b1[0]
    w2q = net.w2[:, :D_OUT].astype(jnp.float32)
    b2q = net.b2[0, :D_OUT]
    h_ref = jnp.maximum(xq @ w1q + b1q, 0.0)
    y_ref = h_ref.astype(jnp.bfloat16).astype(jnp.float32) @ w2q + b2q
    y_ref = y_ref.astype(jnp.bfloat16).astype(jnp.float32)  # kernel stores bf16

    assert y.shape == (B, D_OUT)
    assert jnp.allclose(y, y_ref, atol=2e-2, rtol=2e-2)

    print("KERNEL_OK")
</pallas_src>

<mosaic_0001>
module attributes {stable_mosaic.version = 11 : i64} {
  func.func @_mlp_kernel(%arg0: i32, %arg1: memref<256x32xf32, #tpu.memory_space<vmem>>, %arg2: memref<32x64xbf16, #tpu.memory_space<vmem>>, %arg3: memref<1x64xf32, #tpu.memory_space<vmem>>, %arg4: memref<64x128xbf16, #tpu.memory_space<vmem>>, %arg5: memref<1x128xf32, #tpu.memory_space<vmem>>, %arg6: memref<256x128xbf16, #tpu.memory_space<vmem>>) attributes {dimension_semantics = [#tpu.dimension_semantics<parallel>], iteration_bounds = array<i64: 1>, scalar_prefetch = 0 : i64, scratch_operands = 0 : i64, tpu.core_type = #tpu.core_type<tc>, window_params = [{transform_indices = @transform_0, window_bounds = array<i64: 256, 32>}, {pipeline_mode = #tpu.pipeline_mode<synchronous>, transform_indices = @transform_1, window_bounds = array<i64: 32, 64>}, {pipeline_mode = #tpu.pipeline_mode<synchronous>, transform_indices = @transform_2, window_bounds = array<i64: 1, 64>}, {pipeline_mode = #tpu.pipeline_mode<synchronous>, transform_indices = @transform_3, window_bounds = array<i64: 64, 128>}, {pipeline_mode = #tpu.pipeline_mode<synchronous>, transform_indices = @transform_4, window_bounds = array<i64: 1, 128>}, {transform_indices = @transform_5, window_bounds = array<i64: 256, 128>}]} {
    %c0 = arith.constant 0 : index
    %c0_0 = arith.constant 0 : index
    %0 = vector.load %arg1[%c0, %c0_0] : memref<256x32xf32, #tpu.memory_space<vmem>>, vector<256x32xf32>
    %1 = arith.truncf %0 : vector<256x32xf32> to vector<256x32xbf16>
    %c0_1 = arith.constant 0 : index
    %c0_2 = arith.constant 0 : index
    %2 = vector.load %arg2[%c0_1, %c0_2] : memref<32x64xbf16, #tpu.memory_space<vmem>>, vector<32x64xbf16>
    %cst = arith.constant dense<0.000000e+00> : vector<256x64xf32>
    %3 = tpu.matmul %1, %2, %cst {dimension_numbers = #tpu.dot_dimension_numbers<[1], [0], [0], [1], [0, 0, 1, 1], [], []>} : vector<256x32xbf16>, vector<32x64xbf16>, vector<256x64xf32> -> vector<256x64xf32>
    %c0_3 = arith.constant 0 : index
    %c0_4 = arith.constant 0 : index
    %4 = vector.load %arg3[%c0_3, %c0_4] : memref<1x64xf32, #tpu.memory_space<vmem>>, vector<1x64xf32>
    %5 = vector.broadcast %4 : vector<1x64xf32> to vector<256x64xf32>
    %6 = arith.addf %3, %5 : vector<256x64xf32>
    %cst_5 = arith.constant 0.000000e+00 : f32
    %7 = vector.broadcast %cst_5 : f32 to vector<256x64xf32>
    %8 = arith.maximumf %6, %7 : vector<256x64xf32>
    %9 = arith.truncf %8 : vector<256x64xf32> to vector<256x64xbf16>
    %c0_6 = arith.constant 0 : index
    %c0_7 = arith.constant 0 : index
    %10 = vector.load %arg4[%c0_6, %c0_7] : memref<64x128xbf16, #tpu.memory_space<vmem>>, vector<64x128xbf16>
    %cst_8 = arith.constant dense<0.000000e+00> : vector<256x128xf32>
    %11 = tpu.matmul %9, %10, %cst_8 {dimension_numbers = #tpu.dot_dimension_numbers<[1], [0], [0], [1], [0, 0, 1, 1], [], []>} : vector<256x64xbf16>, vector<64x128xbf16>, vector<256x128xf32> -> vector<256x128xf32>
    %c0_9 = arith.constant 0 : index
    %c0_10 = arith.constant 0 : index
    %12 = vector.load %arg5[%c0_9, %c0_10] : memref<1x128xf32, #tpu.memory_space<vmem>>, vector<1x128xf32>
    %13 = vector.broadcast %12 : vector<1x128xf32> to vector<256x128xf32>
    %14 = arith.addf %11, %13 : vector<256x128xf32>
    %15 = arith.truncf %14 : vector<256x128xf32> to vector<256x128xbf16>
    %c0_11 = arith.constant 0 : index
    %c0_12 = arith.constant 0 : index
    %16 = vector.load %arg6[%c0_11, %c0_12] : memref<256x128xbf16, #tpu.memory_space<vmem>>, vector<256x128xbf16>
    tpu.vector_store %arg6[%c0_11, %c0_12], %15 {strides = array<i32>} : memref<256x128xbf16, #tpu.memory_space<vmem>>, vector<256x128xbf16>,
    return
  }
  func.func @transform_0(%arg0: i32) -> (i32, i32) {
    %c0_i32 = arith.constant 0 : i32
    %c0_i32_0 = arith.constant 0 : i32
    return %arg0, %c0_i32 : i32, i32
  }
  func.func @transform_1(%arg0: i32) -> (i32, i32) {
    %c0_i32 = arith.constant 0 : i32
    %c0_i32_0 = arith.constant 0 : i32
    %c0_i32_1 = arith.constant 0 : i32
    return %c0_i32, %c0_i32_0 : i32, i32
  }
  func.func @transform_2(%arg0: i32) -> (i32, i32) {
    %c0_i32 = arith.constant 0 : i32
    %c0_i32_0 = arith.constant 0 : i32
    %c0_i32_1 = arith.constant 0 : i32
    return %c0_i32, %c0_i32_0 : i32, i32
  }
  func.func @transform_3(%arg0: i32) -> (i32, i32) {
    %c0_i32 = arith.constant 0 : i32
    %c0_i32_0 = arith.constant 0 : i32
    %c0_i32_1 = arith.constant 0 : i32
    return %c0_i32, %c0_i32_0 : i32, i32
  }
  func.func @transform_4(%arg0: i32) -> (i32, i32) {
    %c0_i32 = arith.constant 0 : i32
    %c0_i32_0 = arith.constant 0 : i32
    %c0_i32_1 = arith.constant 0 : i32
    return %c0_i32, %c0_i32_0 : i32, i32
  }
  func.func @transform_5(%arg0: i32) -> (i32, i32) {
    %c0_i32 = arith.constant 0 : i32
    %c0_i32_0 = arith.constant 0 : i32
    return %arg0, %c0_i32 : i32, i32
  }
}

</mosaic_0001>

<bundles_post_ra>
// kernel: _mlp_forward.1
= control target key start
LH: loop header
LB: loop body
LE: loop exit
PB: predicated region body
PF: predicated region fallthrough
CT: control target
= control target key end

     0   :  { %vm89_vm0 = vcmask 261120   ;;  %vm311_vm1 = vcmask 523264   ;;  %s980_s1 = inlined_call_operand.vmem [shape: bf16[32,64], index: 1, kind: input, shape index: {}]   ;;  %s981_s0 = inlined_call_operand.vmem [shape: f32[256,32], index: 0, kind: input, shape index: {}]   ;;  %s982_s2 = inlined_call_operand.vmem [shape: f32[1,64], index: 2, kind: input, shape index: {}]   ;;  %s983_s3 = inlined_call_operand.vmem [shape: bf16[64,128], index: 3, kind: input, shape index: {}]   ;;  %s984_s4 = inlined_call_operand.vmem [shape: f32[1,128], index: 4, kind: input, shape index: {}]   ;;  %s985_s5 = inlined_call_operand.vmem [shape: bf16[256,128], index: 5, kind: output, shape index: {}]  }
   0x1   :  { %v574_v0 = vld [vmem:[%s980_s1 + $0x8] sm:$0xff]  ;;  %v573_v1 = vld [vmem:[%s980_s1] sm:$0xff]  ;;  %v23_v5 = vld [vmem:[%s981_s0 + $0x10] sm:$0xff] }
   0x2   :  { %144 = vmatpush.bf16.msra.mxu0 %v574_v0  ;;  %v21_v2 = vld [vmem:[%s981_s0] sm:$0xff]  ;;  %v22_v3 = vld [vmem:[%s981_s0 + $0x8] sm:$0xff]  ;;  %674 = vmatpush.bf16.msra.mxu3 %v574_v0  ;;  %v24_v6 = vld [vmem:[%s981_s0 + $0x18] sm:$0xff] }
   0x3   :  { %v53_v4 = vpack.c.bf16 %v22_v3, %v21_v2  ;;  %v54_v7 = vpack.c.bf16 %v24_v6, %v23_v5  ;;  %v25_v8 = vld [vmem:[%s981_s0 + $0x20] sm:$0xff]  ;;  %v26_v9 = vld [vmem:[%s981_s0 + $0x28] sm:$0xff]  ;;  %v27_v11 = vld [vmem:[%s981_s0 + $0x30] sm:$0xff] }
   0x4   :  { %v55_v10 = vpack.c.bf16 %v26_v9, %v25_v8  ;;  %v28_v12 = vld [vmem:[%s981_s0 + $0x38] sm:$0xff]  ;;  %v29_v14 = vld [vmem:[%s981_s0 + $0x40] sm:$0xff]  ;;  %v30_v15 = vld [vmem:[%s981_s0 + $0x48] sm:$0xff] }
   0x5   :  { %v56_v13 = vpack.c.bf16 %v28_v12, %v27_v11  ;;  %v57_v16 = vpack.c.bf16 %v30_v15, %v29_v14  ;;  %v31_v17 = vld [vmem:[%s981_s0 + $0x50] sm:$0xff]  ;;  %v32_v18 = vld [vmem:[%s981_s0 + $0x58] sm:$0xff]  ;;  %v33_v20 = vld [vmem:[%s981_s0 + $0x60] sm:$0xff] }
   0x6   :  { %145 = vmatpush.bf16.msra.mxu0 %v573_v1  ;;  %675 = vmatpush.bf16.msra.mxu3 %v573_v1  ;;  %v58_v19 = vpack.c.bf16 %v32_v18, %v31_v17  ;;  %v34_v21 = vld [vmem:[%s981_s0 + $0x68] sm:$0xff]  ;;  %v578_v22 = vld [vmem:[%s983_s3 + $0x18] sm:$0xff]  ;;  %v577_v24 = vld [vmem:[%s983_s3 + $0x10] sm:$0xff] }
   0x7   :  { %v59_v23 = vpack.c.bf16 %v34_v21, %v33_v20  ;;  %364 = vmatpush.bf16.msra.mxu1 %v578_v22  ;;  %676 = vmatpush.bf16.msra.mxu2 %v578_v22  ;;  %v39_v25 = vld [vmem:[%s981_s0 + $0x90] sm:$0xff]  ;;  %v40_v26 = vld [vmem:[%s981_s0 + $0x98] sm:$0xff]  ;;  %v576_v28 = vld [vmem:[%s983_s3 + $0x8] sm:$0xff] }
   0x8   :  { %v62_v27 = vpack.c.bf16 %v40_v26, %v39_v25  ;;  %v575_v29 = vld [vmem:[%s983_s3] sm:$0xff]  ;;  %v35_v30 = vld [vmem:[%s981_s0 + $0x70] sm:$0xff]  ;;  %v36_v31 = vld [vmem:[%s981_s0 + $0x78] sm:$0xff] }
   0x9   :  { %525 = vmatmul.msk.bf16.vlgmr.msra.gmra.mxu0 %vm89_vm0, %v53_v4  ;;  %v60_v32 = vpack.c.bf16 %v36_v31, %v35_v30  ;;  %v41_v33 = vld [vmem:[%s981_s0 + $0xa0] sm:$0xff]  ;;  %v42_v34 = vld [vmem:[%s981_s0 + $0xa8] sm:$0xff]  ;;  %v43_v40 = vld [vmem:[%s981_s0 + $0xb0] sm:$0xff] }
   0xa   :  { %534 = vmatmul.msk.bf16.vlgmr.msra.gmra.mxu3 %vm89_vm0, %v62_v27  ;;  %v63_v35 = vpack.c.bf16 %v42_v34, %v41_v33  ;;  %v37_v36 = vld [vmem:[%s981_s0 + $0x80] sm:$0xff]  ;;  %v38_v37 = vld [vmem:[%s981_s0 + $0x88] sm:$0xff]  ;;  %v44_v41 = vld [vmem:[%s981_s0 + $0xb8] sm:$0xff] }
   0xb   :  { %365 = vmatpush.bf16.msra.mxu1 %v577_v24  ;;  %677 = vmatpush.bf16.msra.mxu2 %v577_v24  ;;  %v61_v38 = vpack.c.bf16 %v38_v37, %v37_v36  ;;  %v815_v42 = vld [vmem:[%s982_s2] ss:$0 sm:$0xff]  ;;  %v64_v43 = vpack.c.bf16 %v44_v41, %v43_v40  ;;  %v46_v52 = vld [vmem:[%s981_s0 + $0xc8] sm:$0xff]  ;;  %v47_v61 = vld [vmem:[%s981_s0 + $0xd0] sm:$0xff] }
   0xc   :  { %v45_v51 = vld [vmem:[%s981_s0 + $0xc0] sm:$0xff]  ;;  %v48_v62 = vld [vmem:[%s981_s0 + $0xd8] sm:$0xff]  ;;  %v50_v8 = vld [vmem:[%s981_s0 + $0xe8] sm:$0xff] }
   0xd   :  { %v65_v53 = vpack.c.bf16 %v46_v52, %v45_v51  ;;  %v66_v63 = vpack.c.bf16 %v48_v62, %v47_v61  ;;  %v51_v17 = vld [vmem:[%s981_s0 + $0xf0] sm:$0xff]  ;;  %v52_v18 = vld [vmem:[%s981_s0 + $0xf8] sm:$0xff] }
   0xf   :  { %366 = vmatpush.bf16.msra.mxu1 %v576_v28  ;;  %678 = vmatpush.bf16.msra.mxu2 %v576_v28 }
  0x13   :  { %367 = vmatpush.bf16.msra.mxu1 %v575_v29  ;;  %679 = vmatpush.bf16.msra.mxu2 %v575_v29 }
  0x19   :  { %526 = vmatmul.msk.bf16.gmra.mxu0 %vm89_vm0, %v54_v7  ;;  %v49_v7 = vld [vmem:[%s981_s0 + $0xe0] sm:$0xff] }
  0x1a   :  { %535 = vmatmul.msk.bf16.gmra.mxu3 %vm89_vm0, %v63_v35  ;;  %v67_v9 = vpack.c.bf16 %v50_v8, %v49_v7 }
  0x29   :  { %527 = vmatmul.msk.bf16.gmra.mxu0 %vm89_vm0, %v55_v10 }
  0x2a   :  { %536 = vmatmul.msk.bf16.gmra.mxu3 %vm89_vm0, %v64_v43 }
  0x39   :  { %528 = vmatmul.msk.bf16.gmra.mxu0 %vm89_vm0, %v56_v13 }
  0x3a   :  { %537 = vmatmul.msk.bf16.gmra.mxu3 %vm89_vm0, %v65_v53 }
  0x49   :  { %529 = vmatmul.msk.bf16.gmra.mxu0 %vm89_vm0, %v57_v16 }
  0x4a   :  { %538 = vmatmul.msk.bf16.gmra.mxu3 %vm89_vm0, %v66_v63 }
  0x59   :  { %530 = vmatmul.msk.bf16.gmra.mxu0 %vm89_vm0, %v58_v19  ;;  %v68_v19 = vpack.c.bf16 %v52_v18, %v51_v17 }
  0x5a   :  { %539 = vmatmul.msk.bf16.gmra.mxu3 %vm89_vm0, %v67_v9 }
  0x69   :  { %531 = vmatmul.msk.bf16.gmra.mxu0 %vm89_vm0, %v59_v23 }
  0x6a   :  { %540 = vmatmul.msk.bf16.gmra.mxu3 %vm89_vm0, %v68_v19 }
  0x79   :  { %532 = vmatmul.msk.bf16.gmra.mxu0 %vm89_vm0, %v60_v32 }
  0x86   :  { %v147_v39 = vpop.f32.mrf.mxu0 }
  0x87   :  { %v148_v44 = vadd.f32 %v815_v42, %v147_v39 }
  0x89   :  { %533 = vmatmul.msk.bf16.gmra.mxu0 %vm89_vm0, %v61_v38  ;;  %v227_v47 = vmax.f32 %v148_v44, 0.0 }
  0x8d   :  { %v192_v41 = vpop.f32.mrf.mxu3 }
  0x8e   :  { %v149_v45 = vpop.f32.mrf.mxu0  ;;  %v193_v62 = vadd.f32 %v815_v42, %v192_v41 }
  0x8f   :  { %v150_v46 = vadd.f32 %v815_v42, %v149_v45 }
  0x91   :  { %v228_v48 = vmax.f32 %v150_v46, 0.0 }
  0x93   :  { %v259_v49 = vpack.c.bf16 %v228_v48, %v227_v47 }
  0x95   :  { %557 = vmatmul.msk.bf16.vlgmr.msra.gmra.mxu1 %vm311_vm1, %v259_v49  ;;  %v194_v46 = vpop.f32.mrf.mxu3 }
  0x96   :  { %v152_v50 = vpop.f32.mrf.mxu0 }
  0x97   :  { %v153_v54 = vadd.f32 %v815_v42, %v152_v50 }
  0x99   :  { %v229_v57 = vmax.f32 %v153_v54, 0.0 }
  0x9d   :  { %v197_v51 = vpop.f32.mrf.mxu3 }
  0x9e   :  { %v154_v55 = vpop.f32.mrf.mxu0 }
  0x9f   :  { %v155_v56 = vadd.f32 %v815_v42, %v154_v55 }
  0xa1   :  { %v230_v58 = vmax.f32 %v155_v56, 0.0 }
  0xa3   :  { %v260_v59 = vpack.c.bf16 %v230_v58, %v229_v57 }
  0xa5   :  { %558 = vmatmul.msk.bf16.gmra.mxu1 %vm311_vm1, %v260_v59  ;;  %v199_v59 = vpop.f32.mrf.mxu3 }
  0xa6   :  { %v157_v60 = vpop.f32.mrf.mxu0 }
  0xa7   :  { %v158_v0 = vadd.f32 %v815_v42, %v157_v60  ;;  %v877_v60 = vld [vmem:[%s984_s4] ss:$0 sm:$0xff] }
  0xa9   :  { %v231_v3 = vmax.f32 %v158_v0, 0.0  ;;  %v195_v0 = vadd.f32 %v815_v42, %v194_v46 }
  0xae   :  { %v159_v1 = vpop.f32.mrf.mxu0 }
  0xaf   :  { %v160_v2 = vadd.f32 %v815_v42, %v159_v1 }
  0xb1   :  { %v232_v4 = vmax.f32 %v160_v2, 0.0 }
  0xb3   :  { %v261_v5 = vpack.c.bf16 %v232_v4, %v231_v3  ;;  %v202_v3 = vpop.f32.mrf.mxu3  ;;  %v245_v4 = vmax.f32 %v193_v62, 0.0 }
  0xb5   :  { %559 = vmatmul.msk.bf16.gmra.mxu1 %vm311_vm1, %v261_v5  ;;  %v246_v5 = vmax.f32 %v195_v0, 0.0 }
  0xb6   :  { %v162_v6 = vpop.f32.mrf.mxu0 }
  0xb7   :  { %v163_v10 = vadd.f32 %v815_v42, %v162_v6  ;;  %v268_v7 = vpack.c.bf16 %v246_v5, %v245_v4 }
  0xb9   :  { %v233_v13 = vmax.f32 %v163_v10, 0.0  ;;  %v198_v10 = vadd.f32 %v815_v42, %v197_v51 }
  0xbb   :  { %v204_v8 = vpop.f32.mrf.mxu3 }
  0xbe   :  { %v164_v11 = vpop.f32.mrf.mxu0 }
  0xbf   :  { %v165_v12 = vadd.f32 %v815_v42, %v164_v11 }
  0xc1   :  { %v234_v14 = vmax.f32 %v165_v12, 0.0  ;;  %v200_v12 = vadd.f32 %v815_v42, %v199_v59 }
  0xc3   :  { %v262_v15 = vpack.c.bf16 %v234_v14, %v233_v13  ;;  %v207_v18 = vpop.f32.mrf.mxu3 }
  0xc5   :  { %560 = vmatmul.msk.bf16.gmra.mxu1 %vm311_vm1, %v262_v15  ;;  %v247_v15 = vmax.f32 %v198_v10, 0.0 }
  0xc6   :  { %v167_v16 = vpop.f32.mrf.mxu0 }
  0xc7   :  { %v168_v20 = vadd.f32 %v815_v42, %v167_v16  ;;  %v248_v16 = vmax.f32 %v200_v12, 0.0 }
  0xc9   :  { %v235_v23 = vmax.f32 %v168_v20, 0.0  ;;  %v269_v19 = vpack.c.bf16 %v248_v16, %v247_v15 }
  0xce   :  { %v169_v21 = vpop.f32.mrf.mxu0 }
  0xcf   :  { %v170_v22 = vadd.f32 %v815_v42, %v169_v21  ;;  %v203_v21 = vadd.f32 %v815_v42, %v202_v3 }
  0xd1   :  { %v236_v24 = vmax.f32 %v170_v22, 0.0 }
  0xd3   :  { %v263_v25 = vpack.c.bf16 %v236_v24, %v235_v23  ;;  %v205_v23 = vadd.f32 %v815_v42, %v204_v8 }
  0xd5   :  { %561 = vmatmul.msk.bf16.gmra.mxu1 %vm311_vm1, %v263_v25  ;;  %v209_v25 = vpop.f32.mrf.mxu3 }
  0xd6   :  { %v172_v26 = vpop.f32.mrf.mxu0 }
  0xd7   :  { %v173_v27 = vadd.f32 %v815_v42, %v172_v26 }
  0xd9   :  { %v237_v30 = vmax.f32 %v173_v27, 0.0  ;;  %v249_v27 = vmax.f32 %v203_v21, 0.0 }
  0xde   :  { %v174_v28 = vpop.f32.mrf.mxu0 }
  0xdf   :  { %v175_v29 = vadd.f32 %v815_v42, %v174_v28  ;;  %v250_v28 = vmax.f32 %v205_v23, 0.0 }
  0xe1   :  { %v238_v31 = vmax.f32 %v175_v29, 0.0 }
  0xe3   :  { %v264_v32 = vpack.c.bf16 %v238_v31, %v237_v30  ;;  %v270_v30 = vpack.c.bf16 %v250_v28, %v249_v27  ;;  %v212_v31 = vpop.f32.mrf.mxu3 }
  0xe4   :  { %v213_v46 = vadd.f32 %v815_v42, %v212_v31 }
  0xe5   :  { %562 = vmatmul.msk.bf16.gmra.mxu1 %vm311_vm1, %v264_v32 }
  0xe6   :  { %v177_v33 = vpop.f32.mrf.mxu0  ;;  %v253_v51 = vmax.f32 %v213_v46, 0.0 }
  0xe7   :  { %v178_v34 = vadd.f32 %v815_v42, %v177_v33  ;;  %v208_v33 = vadd.f32 %v815_v42, %v207_v18 }
  0xe9   :  { %v239_v37 = vmax.f32 %v178_v34, 0.0 }
  0xee   :  { %v179_v35 = vpop.f32.mrf.mxu0 }
  0xef   :  { %v180_v36 = vadd.f32 %v815_v42, %v179_v35  ;;  %v210_v35 = vadd.f32 %v815_v42, %v209_v25 }
  0xf1   :  { %v240_v38 = vmax.f32 %v180_v36, 0.0 }
  0xf3   :  { %v265_v39 = vpack.c.bf16 %v240_v38, %v239_v37  ;;  %v251_v38 = vmax.f32 %v208_v33, 0.0 }
  0xf5   :  { %563 = vmatmul.msk.bf16.gmra.mxu1 %vm311_vm1, %v265_v39  ;;  %v252_v39 = vmax.f32 %v210_v35, 0.0 }
  0xf6   :  { %v182_v40 = vpop.f32.mrf.mxu0 }
  0xf7   :  { %v183_v43 = vadd.f32 %v815_v42, %v182_v40  ;;  %v214_v40 = vpop.f32.mrf.mxu3 }
  0xf9   :  { %v241_v47 = vmax.f32 %v183_v43, 0.0  ;;  %v271_v43 = vpack.c.bf16 %v252_v39, %v251_v38 }
  0xfe   :  { %v184_v44 = vpop.f32.mrf.mxu0 }
  0xff   :  { %v185_v45 = vadd.f32 %v815_v42, %v184_v44 }
 0x101   :  { %v242_v48 = vmax.f32 %v185_v45, 0.0  ;;  %v217_v45 = vpop.f32.mrf.mxu3 }
 0x103   :  { %v266_v49 = vpack.c.bf16 %v242_v48, %v241_v47  ;;  %v215_v48 = vadd.f32 %v815_v42, %v214_v40 }
 0x105   :  { %564 = vmatmul.msk.bf16.gmra.mxu1 %vm311_vm1, %v266_v49 }
 0x106   :  { %v187_v50 = vpop.f32.mrf.mxu0 }
 0x107   :  { %v188_v52 = vadd.f32 %v815_v42, %v187_v50 }
 0x109   :  { %v243_v55 = vmax.f32 %v188_v52, 0.0  ;;  %v254_v52 = vmax.f32 %v215_v48, 0.0 }
 0x10e   :  { %v189_v53 = vpop.f32.mrf.mxu0 }
 0x10f   :  { %v190_v54 = vadd.f32 %v815_v42, %v189_v53 }
 0x111   :  { %v244_v56 = vmax.f32 %v190_v54, 0.0  ;;  %v272_v54 = vpack.c.bf16 %v254_v52, %v253_v51 }
 0x112   :  { %v369_v57 = vpop.f32.mrf.mxu1 }
 0x113   :  { %v267_v58 = vpack.c.bf16 %v244_v56, %v243_v55  ;;  %v370_v63 = vadd.f32 %v877_v60, %v369_v57  ;;  %v219_v55 = vpop.f32.mrf.mxu3  ;;  %v218_v57 = vadd.f32 %v815_v42, %v217_v45 }
 0x114   :  { %v220_v59 = vadd.f32 %v815_v42, %v219_v55 }
 0x115   :  { %565 = vmatmul.msk.bf16.vlgmr.msra.gmra.mxu2 %vm311_vm1, %v267_v58  ;;  %v255_v0 = vmax.f32 %v218_v57, 0.0 }
 0x11a   :  { %v371_v61 = vpop.f32.mrf.mxu1 }
 0x11b   :  { %v372_v1 = vadd.f32 %v877_v60, %v371_v61 }
 0x11d   :  { %v582_v2 = vpack.c.bf16 %v372_v1, %v370_v63  ;;  %v222_v63 = vpop.f32.mrf.mxu3  ;;  %v256_v1 = vmax.f32 %v220_v59, 0.0 }
 0x11f   :  { %583 = vst [vmem:[%s985_s5] sm:$0xff] %v582_v2   ;;  %v273_v3 = vpack.c.bf16 %v256_v1, %v255_v0 }
 0x122   :  { %v374_v6 = vpop.f32.mrf.mxu1 }
 0x123   :  { %v375_v11 = vadd.f32 %v877_v60, %v374_v6  ;;  %v223_v6 = vadd.f32 %v815_v42, %v222_v63 }
 0x125   :  { %566 = vmatmul.msk.bf16.gmra.mxu2 %vm311_vm1, %v268_v7  ;;  %v224_v4 = vpop.f32.mrf.mxu3 }
 0x126   :  { %v225_v8 = vadd.f32 %v815_v42, %v224_v4 }
 0x128   :  { %v258_v12 = vmax.f32 %v225_v8, 0.0 }
 0x12a   :  { %v376_v9 = vpop.f32.mrf.mxu1 }
 0x12b   :  { %v377_v13 = vadd.f32 %v877_v60, %v376_v9 }
 0x12d   :  { %v587_v14 = vpack.c.bf16 %v377_v13, %v375_v11  ;;  %v257_v11 = vmax.f32 %v223_v6, 0.0 }
 0x12f   :  { %659 = vst [vmem:[%s985_s5 + $0x8] sm:$0xff] %v587_v14   ;;  %v274_v14 = vpack.c.bf16 %v258_v12, %v257_v11 }
 0x132   :  { %v379_v17 = vpop.f32.mrf.mxu1 }
 0x133   :  { %v380_v22 = vadd.f32 %v877_v60, %v379_v17 }
 0x135   :  { %567 = vmatmul.msk.bf16.gmra.mxu2 %vm311_vm1, %v269_v19 }
 0x13a   :  { %v381_v20 = vpop.f32.mrf.mxu1 }
 0x13b   :  { %v382_v24 = vadd.f32 %v877_v60, %v381_v20 }
 0x13d   :  { %v592_v26 = vpack.c.bf16 %v382_v24, %v380_v22 }
 0x13f   :  { %660 = vst [vmem:[%s985_s5 + $0x10] sm:$0xff] %v592_v26  }
 0x142   :  { %v384_v29 = vpop.f32.mrf.mxu1 }
 0x143   :  { %v385_v34 = vadd.f32 %v877_v60, %v384_v29 }
 0x145   :  { %568 = vmatmul.msk.bf16.gmra.mxu2 %vm311_vm1, %v270_v30 }
 0x14a   :  { %v386_v32 = vpop.f32.mrf.mxu1 }
 0x14b   :  { %v387_v36 = vadd.f32 %v877_v60, %v386_v32 }
 0x14d   :  { %v597_v37 = vpack.c.bf16 %v387_v36, %v385_v34 }
 0x14f   :  { %661 = vst [vmem:[%s985_s5 + $0x18] sm:$0xff] %v597_v37  }
 0x152   :  { %v389_v41 = vpop.f32.mrf.mxu1 }
 0x153   :  { %v390_v47 = vadd.f32 %v877_v60, %v389_v41 }
 0x155   :  { %569 = vmatmul.msk.bf16.gmra.mxu2 %vm311_vm1, %v271_v43 }
 0x15a   :  { %v391_v44 = vpop.f32.mrf.mxu1 }
 0x15b   :  { %v392_v49 = vadd.f32 %v877_v60, %v391_v44 }
 0x15d   :  { %v602_v50 = vpack.c.bf16 %v392_v49, %v390_v47 }
 0x15f   :  { %662 = vst [vmem:[%s985_s5 + $0x20] sm:$0xff] %v602_v50  }
 0x162   :  { %v394_v53 = vpop.f32.mrf.mxu1 }
 0x163   :  { %v395_v58 = vadd.f32 %v877_v60, %v394_v53 }
 0x165   :  { %570 = vmatmul.msk.bf16.gmra.mxu2 %vm311_vm1, %v272_v54 }
 0x16a   :  { %v396_v56 = vpop.f32.mrf.mxu1 }
 0x16b   :  { %v397_v61 = vadd.f32 %v877_v60, %v396_v56 }
 0x16d   :  { %v607_v62 = vpack.c.bf16 %v397_v61, %v395_v58 }
 0x16f   :  { %663 = vst [vmem:[%s985_s5 + $0x28] sm:$0xff] %v607_v62  }
 0x172   :  { %v399_v2 = vpop.f32.mrf.mxu1 }
 0x173   :  { %v400_v7 = vadd.f32 %v877_v60, %v399_v2 }
 0x175   :  { %571 = vmatmul.msk.bf16.gmra.mxu2 %vm311_vm1, %v273_v3 }
 0x17a   :  { %v401_v5 = vpop.f32.mrf.mxu1 }
 0x17b   :  { %v402_v9 = vadd.f32 %v877_v60, %v401_v5 }
 0x17d   :  { %v612_v10 = vpack.c.bf16 %v402_v9, %v400_v7 }
 0x17f   :  { %664 = vst [vmem:[%s985_s5 + $0x30] sm:$0xff] %v612_v10  }
 0x182   :  { %v404_v13 = vpop.f32.mrf.mxu1 }
 0x183   :  { %v405_v16 = vadd.f32 %v877_v60, %v404_v13 }
 0x185   :  { %572 = vmatmul.msk.bf16.gmra.mxu2 %vm311_vm1, %v274_v14 }
 0x18a   :  { %v406_v15 = vpop.f32.mrf.mxu1 }
 0x18b   :  { %v407_v17 = vadd.f32 %v877_v60, %v406_v15 }
 0x18d   :  { %v617_v18 = vpack.c.bf16 %v407_v17, %v405_v16 }
 0x18f   :  { %665 = vst [vmem:[%s985_s5 + $0x38] sm:$0xff] %v617_v18  }
 0x198   :  { %v409_v42 = vpop.f32.mrf.mxu2 }
 0x199   :  { %v410_v20 = vadd.f32 %v877_v60, %v409_v42 }
 0x1a0   :  { %v411_v19 = vpop.f32.mrf.mxu2 }
 0x1a1   :  { %v412_v21 = vadd.f32 %v877_v60, %v411_v19 }
 0x1a3   :  { %v622_v22 = vpack.c.bf16 %v412_v21, %v410_v20 }
 0x1a5   :  { %666 = vst [vmem:[%s985_s5 + $0x40] sm:$0xff] %v622_v22  }
 0x1a8   :  { %v414_v23 = vpop.f32.mrf.mxu2 }
 0x1a9   :  { %v415_v25 = vadd.f32 %v877_v60, %v414_v23 }
 0x1b0   :  { %v416_v24 = vpop.f32.mrf.mxu2 }
 0x1b1   :  { %v417_v26 = vadd.f32 %v877_v60, %v416_v24 }
 0x1b3   :  { %v627_v27 = vpack.c.bf16 %v417_v26, %v415_v25 }
 0x1b5   :  { %667 = vst [vmem:[%s985_s5 + $0x48] sm:$0xff] %v627_v27  }
 0x1b8   :  { %v419_v28 = vpop.f32.mrf.mxu2 }
 0x1b9   :  { %v420_v30 = vadd.f32 %v877_v60, %v419_v28 }
 0x1c0   :  { %v421_v29 = vpop.f32.mrf.mxu2 }
 0x1c1   :  { %v422_v31 = vadd.f32 %v877_v60, %v421_v29 }
 0x1c3   :  { %v632_v32 = vpack.c.bf16 %v422_v31, %v420_v30 }
 0x1c5   :  { %668 = vst [vmem:[%s985_s5 + $0x50] sm:$0xff] %v632_v32  }
 0x1c8   :  { %v424_v33 = vpop.f32.mrf.mxu2 }
 0x1c9   :  { %v425_v35 = vadd.f32 %v877_v60, %v424_v33 }
 0x1d0   :  { %v426_v34 = vpop.f32.mrf.mxu2 }
 0x1d1   :  { %v427_v36 = vadd.f32 %v877_v60, %v426_v34 }
 0x1d3   :  { %v637_v37 = vpack.c.bf16 %v427_v36, %v425_v35 }
 0x1d5   :  { %669 = vst [vmem:[%s985_s5 + $0x58] sm:$0xff] %v637_v37  }
 0x1d8   :  { %v429_v38 = vpop.f32.mrf.mxu2 }
 0x1d9   :  { %v430_v40 = vadd.f32 %v877_v60, %v429_v38 }
 0x1e0   :  { %v431_v39 = vpop.f32.mrf.mxu2 }
 0x1e1   :  { %v432_v41 = vadd.f32 %v877_v60, %v431_v39 }
 0x1e3   :  { %v642_v43 = vpack.c.bf16 %v432_v41, %v430_v40 }
 0x1e5   :  { %670 = vst [vmem:[%s985_s5 + $0x60] sm:$0xff] %v642_v43  }
 0x1e8   :  { %v434_v44 = vpop.f32.mrf.mxu2 }
 0x1e9   :  { %v435_v46 = vadd.f32 %v877_v60, %v434_v44 }
 0x1f0   :  { %v436_v45 = vpop.f32.mrf.mxu2 }
 0x1f1   :  { %v437_v47 = vadd.f32 %v877_v60, %v436_v45 }
 0x1f3   :  { %v647_v48 = vpack.c.bf16 %v437_v47, %v435_v46 }
 0x1f5   :  { %671 = vst [vmem:[%s985_s5 + $0x68] sm:$0xff] %v647_v48  }
 0x1f8   :  { %v439_v49 = vpop.f32.mrf.mxu2 }
 0x1f9   :  { %v440_v51 = vadd.f32 %v877_v60, %v439_v49 }
 0x200   :  { %v441_v50 = vpop.f32.mrf.mxu2 }
 0x201   :  { %v442_v52 = vadd.f32 %v877_v60, %v441_v50 }
 0x203   :  { %v652_v53 = vpack.c.bf16 %v442_v52, %v440_v51 }
 0x205   :  { %672 = vst [vmem:[%s985_s5 + $0x70] sm:$0xff] %v652_v53  }
 0x208   :  { %v444_v54 = vpop.f32.mrf.mxu2 }
 0x209   :  { %v445_v56 = vadd.f32 %v877_v60, %v444_v54 }
 0x210   :  { %v446_v55 = vpop.f32.mrf.mxu2 }
 0x211   :  { %v447_v57 = vadd.f32 %v877_v60, %v446_v55 }
 0x213   :  { %v657_v58 = vpack.c.bf16 %v447_v57, %v445_v56 }
 0x215   :  { %673 = vst [vmem:[%s985_s5 + $0x78] sm:$0xff] %v657_v58  }

</bundles_post_ra>
